<compile_context>
chip_gen: v7x
topology: tpu7x:2x2x1
jax: 0.10.0
libtpu: 0.0.40
codegen_flags: <defaults>
</compile_context>

<pallas_src>
import jax
import jax.numpy as jnp
from jax import lax
from jax.experimental import pallas as pl
from jax.experimental.pallas import tpu as pltpu

EMB_DIM = 32        # params.emb_dim
DIS_HID_DIM = 32    # params.dis_hid_dim
DIS_LAYERS = 2      # params.dis_layers
LEAK = 0.2          # LeakyReLU negative slope

P = 8                     # batch rows packed per lane group (8 * 32 = 256 lanes)
PK = P * EMB_DIM          # packed input width  (256)
PH = P * DIS_HID_DIM      # packed hidden width (256)
CHUNK = 128               # packed rows per in-kernel sub-chunk (~128 KiB f32 live)
DEFAULT_BLOCK_ROWS = 8192  # original batch rows per grid step (= 1024 packed rows)


def _leaky_relu(h):
    return jnp.where(h > 0, h, LEAK * h)


def discriminator_kernel(x_ref, w0_ref, b0_ref, w1_ref, b1_ref, w2t_ref, b2_ref,
                         o_ref):
    """One tile of packed batch rows.

    x_ref  : (TM_P, PK) f32   packed input rows
    w0_ref : (PK, PH)   bf16  block-diag Linear(emb->hid) weight
    b0_ref : (1, PH)    f32   tiled bias
    w1_ref : (PH, PH)   bf16  block-diag Linear(hid->hid) weight
    b1_ref : (1, PH)    f32   tiled bias
    w2t_ref: (P, PH)    bf16  block-diag Linear(hid->1) weight, transposed
    b2_ref : (1,)       f32   scalar bias (SMEM)
    o_ref  : (P, TM_P)  f32   o_ref[p, i] = sigmoid(logit of packed row i, sub-row p)
    """
    num_chunks = x_ref.shape[0] // CHUNK  # static

    def body(c, carry):
        off = pl.multiple_of(c * CHUNK, CHUNK)
        x = x_ref[pl.ds(off, CHUNK), :].astype(jnp.bfloat16)        # (CHUNK, PK)

        # Linear(emb -> hid) + LeakyReLU (f32 accumulation on the MXU).
        h = jnp.dot(x, w0_ref[...], preferred_element_type=jnp.float32)
        h = _leaky_relu(h + b0_ref[...])

        # Linear(hid -> hid) + LeakyReLU.
        h = jnp.dot(h.astype(jnp.bfloat16), w1_ref[...],
                    preferred_element_type=jnp.float32)
        h = _leaky_relu(h + b1_ref[...])

        # Linear(hid -> 1) as an NT matmul -> dense (P, CHUNK) logits block.
        logits = lax.dot_general(
            w2t_ref[...], h.astype(jnp.bfloat16),
            dimension_numbers=(((1,), (1,)), ((), ())),
            preferred_element_type=jnp.float32)                      # (P, CHUNK)
        logits = logits + b2_ref[0]

        # sigmoid(x) = 1 / (1 + exp(-x)); both transcendentals on the EUP slot.
        z = jnp.exp(-logits)
        o_ref[:, pl.ds(off, CHUNK)] = pl.reciprocal(1.0 + z, approx=True)
        return carry

    lax.fori_loop(0, num_chunks, body, 0)


def discriminator_forward(x, packed_params, *, block_rows=DEFAULT_BLOCK_ROWS):
    """x: [N, emb_dim] float -> [N] float32 (matches .view(-1), eval mode)."""
    assert x.ndim == 2 and x.shape[1] == EMB_DIM
    w0b, b0t, w1b, b1t, w2bt, b2 = packed_params
    n = x.shape[0]

    # Pack P rows into the lane dimension.  The reshape is a free row-major
    # reinterpretation; the small zero-pad copy only happens when N % 8 != 0.
    if n % P:
        x = jnp.pad(x, ((0, P - n % P), (0, 0)))
    npr = x.shape[0] // P                       # number of packed rows
    xp = x.reshape(npr, PK)

    # Tile size (in packed rows): a multiple of CHUNK, capped at block_rows,
    # and split so grid >= 2 whenever possible (keeps both v7x TCs busy).
    bp = max(CHUNK, (block_rows // P) // CHUNK * CHUNK)
    npc = pl.cdiv(npr, CHUNK) * CHUNK
    if npc >= 2 * CHUNK:
        tm_p = min(bp, pl.cdiv(npc // 2, CHUNK) * CHUNK)
    else:
        tm_p = CHUNK
    assert tm_p % CHUNK == 0
    grid = pl.cdiv(npr, tm_p)

    out = pl.pallas_call(
        discriminator_kernel,
        out_shape=jax.ShapeDtypeStruct((grid, P, tm_p), jnp.float32),
        grid=(grid,),
        in_specs=[
            pl.BlockSpec((tm_p, PK), lambda i: (i, 0)),        # x tile (streamed)
            pl.BlockSpec((PK, PH), lambda i: (0, 0)),          # w0 block-diag
            pl.BlockSpec((1, PH), lambda i: (0, 0)),           # b0 tiled
            pl.BlockSpec((PH, PH), lambda i: (0, 0)),          # w1 block-diag
            pl.BlockSpec((1, PH), lambda i: (0, 0)),           # b1 tiled
            pl.BlockSpec((P, PH), lambda i: (0, 0)),           # w2^T block-diag
            pl.BlockSpec((1,), lambda i: (0,),
                         memory_space=pltpu.MemorySpace.SMEM),  # b2 scalar
        ],
        out_specs=pl.BlockSpec((None, P, tm_p), lambda i: (i, 0, 0)),  # dense slab
        compiler_params=pltpu.CompilerParams(
            dimension_semantics=("parallel",)),
    )(xp, w0b, b0t, w1b, b1t, w2bt, b2)

    # out[g, p, i] = sigmoid of original row (g*tm_p + i)*P + p  ->  row-major.
    return out.transpose(0, 2, 1).reshape(-1)[:n]


def init_params(key):
    """nn.Linear-style init (uniform +-1/sqrt(fan_in)); weights stored [in, out]."""
    dims = []
    for i in range(DIS_LAYERS + 1):
        in_d = EMB_DIM if i == 0 else DIS_HID_DIM
        out_d = 1 if i == DIS_LAYERS else DIS_HID_DIM
        dims.append((in_d, out_d))

    params = []
    for in_d, out_d in dims:
        key, kw, kb = jax.random.split(key, 3)
        bound = 1.0 / (in_d ** 0.5)
        w = jax.random.uniform(kw, (in_d, out_d), jnp.float32, -bound, bound)
        b = jax.random.uniform(kb, (out_d,), jnp.float32, -bound, bound)
        params.append((w, b))
    return params


def pack_params(params):
    """Build the lane-packed kernel layout (block-diagonal bf16 weights)."""
    (w0, b0), (w1, b1), (w2, b2) = params
    eye = jnp.eye(P, dtype=jnp.float32)
    w0b = jnp.kron(eye, w0).astype(jnp.bfloat16)              # (PK, PH)
    w1b = jnp.kron(eye, w1).astype(jnp.bfloat16)              # (PH, PH)
    b0t = jnp.tile(b0, P).reshape(1, PH).astype(jnp.float32)  # (1, PH)
    b1t = jnp.tile(b1, P).reshape(1, PH).astype(jnp.float32)  # (1, PH)
    w2bt = jnp.kron(eye, w2).T.astype(jnp.bfloat16)           # (P, PH)
    b2s = b2.reshape(1).astype(jnp.float32)                   # (1,) -> SMEM
    return (w0b, b0t, w1b, b1t, w2bt, b2s)


def reference_forward(x, params):
    """Plain-JAX reference (same bf16 matmul inputs / f32 accumulation)."""
    (w0, b0), (w1, b1), (w2, b2) = params
    h = jnp.dot(x.astype(jnp.bfloat16), w0.astype(jnp.bfloat16),
                preferred_element_type=jnp.float32) + b0
    h = _leaky_relu(h)
    h = jnp.dot(h.astype(jnp.bfloat16), w1.astype(jnp.bfloat16),
                preferred_element_type=jnp.float32) + b1
    h = _leaky_relu(h)
    logits = jnp.dot(h.astype(jnp.bfloat16), w2.astype(jnp.bfloat16),
                     preferred_element_type=jnp.float32) + b2
    return jax.nn.sigmoid(logits).reshape(-1)


if __name__ == "__main__":
    key = jax.random.PRNGKey(0)
    key, kx = jax.random.split(key)

    # Small but non-trivial: exercises ragged N % 8, a 2-tile grid, a partial
    # last tile, and the in-kernel 2-chunk loop.
    N = 2500
    x = jax.random.normal(kx, (N, EMB_DIM), jnp.float32)

    params = init_params(key)
    packed = pack_params(params)

    out = jax.block_until_ready(discriminator_forward(x, packed))
    ref = reference_forward(x, params)

    assert out.shape == (N,), out.shape
    assert bool(jnp.all(jnp.isfinite(out)))
    max_err = float(jnp.max(jnp.abs(out - ref)))
    assert max_err < 5e-3, max_err

    print("KERNEL_OK")
</pallas_src>

<mosaic_0001>
module attributes {stable_mosaic.version = 11 : i64} {
  func.func @discriminator_kernel(%arg0: i32, %arg1: memref<256x256xf32, #tpu.memory_space<vmem>>, %arg2: memref<256x256xbf16, #tpu.memory_space<vmem>>, %arg3: memref<1x256xf32, #tpu.memory_space<vmem>>, %arg4: memref<256x256xbf16, #tpu.memory_space<vmem>>, %arg5: memref<1x256xf32, #tpu.memory_space<vmem>>, %arg6: memref<8x256xbf16, #tpu.memory_space<vmem>>, %arg7: memref<1xf32, #tpu.memory_space<smem>>, %arg8: memref<1x8x256xf32, #tpu.memory_space<vmem>>) attributes {dimension_semantics = [#tpu.dimension_semantics<parallel>], iteration_bounds = array<i64: 2>, scalar_prefetch = 0 : i64, scratch_operands = 0 : i64, tpu.core_type = #tpu.core_type<tc>, window_params = [{transform_indices = @transform_0, window_bounds = array<i64: 256, 256>}, {pipeline_mode = #tpu.pipeline_mode<synchronous>, transform_indices = @transform_1, window_bounds = array<i64: 256, 256>}, {pipeline_mode = #tpu.pipeline_mode<synchronous>, transform_indices = @transform_2, window_bounds = array<i64: 1, 256>}, {pipeline_mode = #tpu.pipeline_mode<synchronous>, transform_indices = @transform_3, window_bounds = array<i64: 256, 256>}, {pipeline_mode = #tpu.pipeline_mode<synchronous>, transform_indices = @transform_4, window_bounds = array<i64: 1, 256>}, {pipeline_mode = #tpu.pipeline_mode<synchronous>, transform_indices = @transform_5, window_bounds = array<i64: 8, 256>}, {transform_indices = @transform_6, window_bounds = array<i64: 1>}, {transform_indices = @transform_7, window_bounds = array<i64: 1, 8, 256>}]} {
    %c0_i32 = arith.constant 0 : i32
    %c2_i32 = arith.constant 2 : i32
    %0 = arith.addi %c0_i32, %c2_i32 : i32
    %c1_i32 = arith.constant 1 : i32
    scf.for %arg9 = %c0_i32 to %0 step %c1_i32  : i32 {
      %c128_i32 = arith.constant 128 : i32
      %1 = arith.muli %arg9, %c128_i32 : i32
      %2 = tpu.assume_multiple %1, 128 : i32
      %3 = arith.index_cast %2 : i32 to index
      %c0 = arith.constant 0 : index
      %4 = vector.load %arg1[%3, %c0] : memref<256x256xf32, #tpu.memory_space<vmem>>, vector<128x256xf32>
      %5 = arith.truncf %4 : vector<128x256xf32> to vector<128x256xbf16>
      %c0_1 = arith.constant 0 : index
      %c0_2 = arith.constant 0 : index
      %6 = vector.load %arg2[%c0_1, %c0_2] : memref<256x256xbf16, #tpu.memory_space<vmem>>, vector<256x256xbf16>
      %cst = arith.constant dense<0.000000e+00> : vector<128x256xf32>
      %7 = tpu.matmul %5, %6, %cst {dimension_numbers = #tpu.dot_dimension_numbers<[1], [0], [0], [1], [0, 0, 1, 1], [], []>} : vector<128x256xbf16>, vector<256x256xbf16>, vector<128x256xf32> -> vector<128x256xf32>
      %c0_3 = arith.constant 0 : index
      %c0_4 = arith.constant 0 : index
      %8 = vector.load %arg3[%c0_3, %c0_4] : memref<1x256xf32, #tpu.memory_space<vmem>>, vector<1x256xf32>
      %9 = vector.broadcast %8 : vector<1x256xf32> to vector<128x256xf32>
      %10 = arith.addf %7, %9 : vector<128x256xf32>
      %cst_5 = arith.constant 0.000000e+00 : f32
      %11 = vector.broadcast %cst_5 : f32 to vector<128x256xf32>
      %12 = arith.cmpf ogt, %10, %11 : vector<128x256xf32>
      %cst_6 = arith.constant 2.000000e-01 : f32
      %13 = vector.broadcast %cst_6 : f32 to vector<128x256xf32>
      %14 = arith.mulf %13, %10 : vector<128x256xf32>
      %15 = arith.select %12, %10, %14 : vector<128x256xi1>, vector<128x256xf32>
      %16 = arith.truncf %15 : vector<128x256xf32> to vector<128x256xbf16>
      %c0_7 = arith.constant 0 : index
      %c0_8 = arith.constant 0 : index
      %17 = vector.load %arg4[%c0_7, %c0_8] : memref<256x256xbf16, #tpu.memory_space<vmem>>, vector<256x256xbf16>
      %cst_9 = arith.constant dense<0.000000e+00> : vector<128x256xf32>
      %18 = tpu.matmul %16, %17, %cst_9 {dimension_numbers = #tpu.dot_dimension_numbers<[1], [0], [0], [1], [0, 0, 1, 1], [], []>} : vector<128x256xbf16>, vector<256x256xbf16>, vector<128x256xf32> -> vector<128x256xf32>
      %c0_10 = arith.constant 0 : index
      %c0_11 = arith.constant 0 : index
      %19 = vector.load %arg5[%c0_10, %c0_11] : memref<1x256xf32, #tpu.memory_space<vmem>>, vector<1x256xf32>
      %20 = vector.broadcast %19 : vector<1x256xf32> to vector<128x256xf32>
      %21 = arith.addf %18, %20 : vector<128x256xf32>
      %cst_12 = arith.constant 0.000000e+00 : f32
      %22 = vector.broadcast %cst_12 : f32 to vector<128x256xf32>
      %23 = arith.cmpf ogt, %21, %22 : vector<128x256xf32>
      %cst_13 = arith.constant 2.000000e-01 : f32
      %24 = vector.broadcast %cst_13 : f32 to vector<128x256xf32>
      %25 = arith.mulf %24, %21 : vector<128x256xf32>
      %26 = arith.select %23, %21, %25 : vector<128x256xi1>, vector<128x256xf32>
      %c0_14 = arith.constant 0 : index
      %c0_15 = arith.constant 0 : index
      %27 = vector.load %arg6[%c0_14, %c0_15] : memref<8x256xbf16, #tpu.memory_space<vmem>>, vector<8x256xbf16>
      %28 = arith.truncf %26 : vector<128x256xf32> to vector<128x256xbf16>
      %cst_16 = arith.constant dense<0.000000e+00> : vector<8x128xf32>
      %29 = tpu.matmul %27, %28, %cst_16 {dimension_numbers = #tpu.dot_dimension_numbers<[1], [1], [0], [0], [0, 0, 1, 0], [], []>} : vector<8x256xbf16>, vector<128x256xbf16>, vector<8x128xf32> -> vector<8x128xf32>
      %c0_17 = arith.constant 0 : index
      %30 = memref.load %arg7[%c0_17] : memref<1xf32, #tpu.memory_space<smem>>
      %31 = vector.broadcast %30 : f32 to vector<8x128xf32>
      %32 = arith.addf %29, %31 : vector<8x128xf32>
      %cst_18 = arith.constant 0.000000e+00 : f32
      %33 = vector.broadcast %cst_18 : f32 to vector<8x128xf32>
      %34 = arith.subf %33, %32 : vector<8x128xf32>
      %35 = math.exp %34 : vector<8x128xf32>
      %cst_19 = arith.constant 1.000000e+00 : f32
      %36 = vector.broadcast %cst_19 : f32 to vector<8x128xf32>
      %37 = arith.addf %36, %35 : vector<8x128xf32>
      %38 = tpu.reciprocal %37 {approx = true} : vector<8x128xf32> -> vector<8x128xf32>
      %c0_20 = arith.constant 0 : index
      %c0_21 = arith.constant 0 : index
      %39 = arith.index_cast %2 : i32 to index
      %40 = vector.load %arg8[%c0_20, %c0_21, %39] : memref<1x8x256xf32, #tpu.memory_space<vmem>>, vector<1x8x128xf32>
      %41 = vector.shape_cast %40 : vector<1x8x128xf32> to vector<8x128xf32>
      %42 = vector.shape_cast %38 : vector<8x128xf32> to vector<1x8x128xf32>
      tpu.vector_store %arg8[%c0_20, %c0_21, %39], %42 {strides = array<i32>} : memref<1x8x256xf32, #tpu.memory_space<vmem>>, vector<1x8x128xf32>,
    }
    %c2_i32_0 = arith.constant 2 : i32
    return
  }
  func.func @transform_0(%arg0: i32) -> (i32, i32) {
    %c0_i32 = arith.constant 0 : i32
    %c0_i32_0 = arith.constant 0 : i32
    return %arg0, %c0_i32 : i32, i32
  }
  func.func @transform_1(%arg0: i32) -> (i32, i32) {
    %c0_i32 = arith.constant 0 : i32
    %c0_i32_0 = arith.constant 0 : i32
    %c0_i32_1 = arith.constant 0 : i32
    return %c0_i32, %c0_i32_0 : i32, i32
  }
  func.func @transform_2(%arg0: i32) -> (i32, i32) {
    %c0_i32 = arith.constant 0 : i32
    %c0_i32_0 = arith.constant 0 : i32
    %c0_i32_1 = arith.constant 0 : i32
    return %c0_i32, %c0_i32_0 : i32, i32
  }
  func.func @transform_3(%arg0: i32) -> (i32, i32) {
    %c0_i32 = arith.constant 0 : i32
    %c0_i32_0 = arith.constant 0 : i32
    %c0_i32_1 = arith.constant 0 : i32
    return %c0_i32, %c0_i32_0 : i32, i32
  }
  func.func @transform_4(%arg0: i32) -> (i32, i32) {
    %c0_i32 = arith.constant 0 : i32
    %c0_i32_0 = arith.constant 0 : i32
    %c0_i32_1 = arith.constant 0 : i32
    return %c0_i32, %c0_i32_0 : i32, i32
  }
  func.func @transform_5(%arg0: i32) -> (i32, i32) {
    %c0_i32 = arith.constant 0 : i32
    %c0_i32_0 = arith.constant 0 : i32
    %c0_i32_1 = arith.constant 0 : i32
    return %c0_i32, %c0_i32_0 : i32, i32
  }
  func.func @transform_6(%arg0: i32) -> i32 {
    %c0_i32 = arith.constant 0 : i32
    %c0_i32_0 = arith.constant 0 : i32
    return %c0_i32 : i32
  }
  func.func @transform_7(%arg0: i32) -> (i32, i32, i32) {
    %c0_i32 = arith.constant 0 : i32
    %c0_i32_0 = arith.constant 0 : i32
    %c0_i32_1 = arith.constant 0 : i32
    return %arg0, %c0_i32, %c0_i32_0 : i32, i32, i32
  }
}

</mosaic_0001>

<bundles_post_ra>
// kernel: tpu_custom_call.1
= control target key start
LH: loop header
LB: loop body
LE: loop exit
PB: predicated region body
PF: predicated region fallthrough
CT: control target
= control target key end

     0   :  { %s2301_s0 = inlined_call_operand.hbm [shape: f32[313,256], index: 0, kind: input, shape index: {}]   ;;  %s2302_s1 = inlined_call_operand.hbm [shape: bf16[256,256], index: 1, kind: input, shape index: {}]   ;;  %s2303_s2 = inlined_call_operand.vmem [shape: f32[1,256], index: 2, kind: input, shape index: {}]   ;;  %s2304_s3 = inlined_call_operand.hbm [shape: bf16[256,256], index: 3, kind: input, shape index: {}]   ;;  %s2305_s4 = inlined_call_operand.vmem [shape: f32[1,256], index: 4, kind: input, shape index: {}]   ;;  %s2306_s5 = inlined_call_operand.vmem [shape: bf16[8,256], index: 5, kind: input, shape index: {}]   ;;  %s2307_s6 = inlined_call_operand.<no memory space> [shape: f32[1], index: 6, kind: input, shape index: {}]   ;;  %s2308_s7 = inlined_call_operand.hbm [shape: f32[2,8,256], index: 7, kind: output, shape index: {}]  }
   0x1   :  { %12 = sst [smem:[#allocation2]] %s2307_s6 }
   0x2   :  { %13 = vsyncpa [#allocation4], 0 }
   0x3   :  { %15 = vsyncpa [#allocation4 + $0x1], 0 }
   0x4   :  { %16 = vsyncpa [#allocation7], 0 }
   0x5   :  { %17 = vsyncpa [#allocation5], 0 }
   0x6   :  { %19 = vsyncpa [#allocation5 + $0x1], 0  ;;  %s1922_s26 = smov 0   ;;  %s1924_s27 = smov 0  }
   0x7   :  { %s1926_s28 = smov 0   ;;  %s1928_s29 = smov 0  }
   0x8 LB: > { %s1943_s6 = sadd.s32 4294967295, %s1865_s29   ;;  %s1433_s30 = sadd.s32 4294967294, %s1865_s29   ;;  %s1865_s29 = sphi %s1928_s29, %s2330_s29   ;;  %s1861_s28 = sphi %s1926_s28, %s2334_s28   ;;  %s1857_s27 = sphi %s1924_s27, %s2333_s27   ;;  %s1853_s26 = sphi %s1922_s26, %s2332_s26  }
   0x9   : > { %s1947_s8 = sadd.s32 1, %s1865_s29   ;;  %s32_s9 = sadd.s32 1, %s1861_s28 }
   0xa   : > { %2315 = sst [smem:[#allocation13_spill]] %s1947_s8  ;;  %s29_s10 = ssub.s32 %s1865_s29, %s1947_s8 }
   0xb   : > { %p39_p0 = scmp.ne.s32.totalorder %s1861_s28, %s1857_s27  ;;  %p30_p1 = scmp.eq.s32.totalorder %s29_s10, 0 }
   0xc   : > { %p40_p2 = scmp.eq.s32.totalorder %s1865_s29, 0  ;;  %p45_p3 = scmp.ne.s32.totalorder %s1857_s27, %s1853_s26 }
   0xd   : > { %p2309_p4 = scmp.eq.s32.totalorder %s1943_s6, 0  ;;  %p195_p7 = scmp.eq.s32.totalorder %s1943_s6, 1 }
   0xe   : > { %s1959_s11 = scalar_select %p30_p1, %s1861_s28, %s32_s9  }
   0xf   : > { %p1961_p5 = por %p40_p2, %p39_p0  ;;  %p1967_p6 = por %p2309_p4, %p45_p3 }
  0x10   : > { %2316 = sst [smem:[#allocation14_spill]] %s1959_s11  ;;  %p201_p8 = scmp.eq.s32.totalorder %s1433_s30, 1 }
  0x11   : > { %s2317_s12 = scalar_select %p1961_p5, 1, 0 }
  0x12   : > { %s2318_s13 = scalar_select %p1967_p6, 1, 0 }
  0x13   : > { %p1434_p9 = scmp.ge.s32.totalorder %s1865_s29, 1  ;;  %p208_p10 = scmp.lt.s32.totalorder %s1865_s29, 3 }
  0x14   : > { %p1974_p11 = por %p195_p7, %p39_p0  ;;  %p1978_p12 = por %p201_p8, %p45_p3 }
  0x15   : > { %p1982_p13 = pnand %p1434_p9, %p208_p10  ;;  %s1871_s17 = smov [#allocation6]  }
  0x16   : > { %s2319_s14 = scalar_select %p1974_p11, 1, 0 }
  0x17   : > { %s2320_s15 = scalar_select %p1978_p12, 1, 0 }
  0x18   : > { %s2321_s16 = scalar_select %p1982_p13, 1, 0 }
  0x19   : > { %p1543_p1 = pneg %p1982_p13  ;;  %s220_s18 = sshll.u32 %s1871_s17, 4  ;;  %s221_s18 = int_to_ptr.vmem [resolvable:$true] %s220_s18 }
  0x1a   : > { %s1872_s20 = smov [#allocation8]   ;;  %s1707_s24 = scalar_lea.hbm %s2302_s1, 4096 }
  0x1b   : > { %p1990_p2 = pnand %p1543_p1, %p2309_p4  ;;  %s236_s21 = sshll.u32 %s1872_s20, 4  ;;  %s1994_s21 = int_to_ptr.vmem [resolvable:$true] %s236_s21 }
  0x1c   : > { %p1708_p0 = scmp.ne.s32.totalorder %s2302_s1, %s1707_s24  ;;  %p1714_p9 = scmp.lt.u32.totalorder %s1707_s24, %s2302_s1 }
  0x1d   : > { %p1709_p3 = pneg %p1990_p2 }
  0x1f   : > { %p1710_p7 = pnand %p1709_p3, %p1708_p0 }
  0x21   : > { %p1711_p8 = pneg %p1710_p7 }
  0x23   : > { %p1716_p10 = pnand %p1714_p9, %p1711_p8 }
  0x25   : > { %1719 = shalt.err (!%p1716_p10)
}
  0x26   : > { %s1720_s17 = scalar_lea.vmem %s221_s18, 4096  ;;  %p1728_p11 = scmp.lt.s32.totalorder %s221_s18, %s221_s18 }
  0x27   : > { %p1721_p1 = scmp.ne.s32.totalorder %s221_s18, %s1720_s17  ;;  %p1729_p6 = scmp.lt.s32.totalorder %s1720_s17, %s1720_s17 }
  0x29   : > { %p1723_p4 = pnand %p1721_p1, %p1709_p3  ;;  %p1730_p13 = por %p1729_p6, %p1728_p11 }
  0x2b   : > { %p1724_p12 = pneg %p1723_p4 }
  0x2d   : > { %p1731_p5 = pnand %p1730_p13, %p1724_p12 }
  0x2f   : > { %1734 = shalt.err (!%p1731_p5)
}
  0x30   : > { %s1873_s20 = smov 128   ;;  %s1874_s22 = smov 8  }
  0x31   : > { %1546 = dma.hbm_to_vmem [thread:$0]  (!%p1990_p2), %s2302_s1, 4096, %s221_s18, [#allocation7], %s1873_s20, %s1873_s20, %s1874_s22  }
  0x32   : > { %s1735_s9 = scalar_lea.hbm %s2304_s3, 4096 }
  0x33   : > { %p1736_p4 = scmp.ne.s32.totalorder %s2304_s3, %s1735_s9  ;;  %p1742_p11 = scmp.lt.u32.totalorder %s1735_s9, %s2304_s3 }
  0x35   : > { %p1738_p5 = pnand %p1736_p4, %p1709_p3 }
  0x37   : > { %p1739_p6 = pneg %p1738_p5 }
  0x39   : > { %p1744_p12 = pnand %p1742_p11, %p1739_p6 }
  0x3b   : > { %1747 = shalt.err (!%p1744_p12)
}
  0x3c   : > { %s1748_s18 = scalar_lea.vmem %s1994_s21, 4096  ;;  %p1756_p8 = scmp.lt.s32.totalorder %s1994_s21, %s1994_s21 }
  0x3d   : > { %p1749_p13 = scmp.ne.s32.totalorder %s1994_s21, %s1748_s18  ;;  %p1757_p9 = scmp.lt.s32.totalorder %s1748_s18, %s1748_s18 }
  0x3f   : > { %p1751_p0 = pnand %p1749_p13, %p1709_p3  ;;  %p1758_p10 = por %p1757_p9, %p1756_p8 }
  0x41   : > { %p1752_p7 = pneg %p1751_p0 }
  0x43   : > { %p1759_p1 = pnand %p1758_p10, %p1752_p7 }
  0x45   : > { %1762 = shalt.err (!%p1759_p1)
}
  0x46   : > { %1549 = dma.hbm_to_vmem [thread:$0]  (!%p1990_p2), %s2304_s3, 4096, %s1994_s21, [#allocation7], %s1873_s20, %s1873_s20, %s1874_s22  }
  0x47   : > { %p1437_p4 = scmp.ge.s32.totalorder %s1865_s29, 2 }
  0x48   : > { %p2323_p3 = scmp.ne.s32.totalorder (!%p1437_p4), %s2317_s12, 0 }
  0x49   : > { %255 = sbr.rel (%p1437_p4) target bundleno = 115 (0x73), region = 40 }
  0x50   : > { %258 = sbr.rel (!%p2323_p3) target bundleno = 115 (0x73), region = 44  ;;  %s259_s23 = sand.u32 (%p2323_p3), 1, %s1861_s28  }
  0x51   : > { %s1439_s24 = sshll.u32 (%p2323_p3), %s1865_s29, 5  ;;  %s1438_s25 = sshll.u32 (%p2323_p3), %s259_s23, 9 }
  0x52   : > { %s265_s30 = ssub.s32 (%p2323_p3), 40, %s1439_s24  ;;  %s2053_s20 = scalar_lea.sflag (%p2323_p3), [#allocation4], %s259_s23 }
  0x53   : > { %p266_p5 = scmp.lt.s32.totalorder (%p2323_p3), %s265_s30, 32  ;;  %s263_s22 = scalar_lea.vmem (%p2323_p3), [#allocation3], %s1438_s25 }
  0x57   : > { %s2336_s30 = smov (!%p266_p5, %s265_s30), 32 }
  0x58   : > { %s2050_s19 = sshll.u32 %s2336_s30, 8 }
  0x59   : > { %s271_s21 = ssub.s32 8192, %s2050_s19 }
  0x5a   : > { %272 = vsyncadd %s2053_s20, %s271_s21  ;;  %p1442_p2 = scmp.ne.s32.totalorder %s2050_s19, 0  ;;  %s1529_s12 = sshll.u32 %s1865_s29, 13 }
  0x5b   : > { %s2061_s17 = scalar_lea.hbm %s2301_s0, %s1529_s12  ;;  %s278_s18 = sshll.u32 %s263_s22, 4  ;;  %s2063_s18 = int_to_ptr.vmem [resolvable:$true] %s278_s18 }
  0x5c   : > { %s1763_s8 = scalar_lea.hbm %s2061_s17, %s2050_s19  ;;  %s1767_s24 = scalar_lea.hbm %s2301_s0, 10240 }
  0x5d   : > { %p1764_p6 = scmp.ne.s32.totalorder %s2061_s17, %s1763_s8  ;;  %p1768_p13 = scmp.lt.u32.totalorder %s2061_s17, %s2301_s0 }
  0x5e   : > { %p1769_p0 = scmp.lt.u32.totalorder %s1767_s24, %s1763_s8  ;;  %p1771_p8 = scmp.lt.u32.totalorder %s1763_s8, %s2061_s17 }
  0x5f   : > { %p1765_p11 = pnand %p1764_p6, %p1442_p2 }
  0x60   : > { %p1770_p7 = por %p1769_p0, %p1768_p13 }
  0x61   : > { %p1766_p12 = pneg %p1765_p11 }
  0x62   : > { %p1772_p9 = por %p1771_p8, %p1770_p7 }
  0x64   : > { %p1773_p10 = pnand %p1772_p9, %p1766_p12 }
  0x66   : > { %1776 = shalt.err (!%p1773_p10)
}
  0x67   : > { %s1777_s21 = scalar_lea.vmem %s2063_s18, %s2050_s19  ;;  %s1875_s22 = smov [#allocation3]  }
  0x68   : > { %p1778_p1 = scmp.ne.s32.totalorder %s2063_s18, %s1777_s21  ;;  %s1781_s12 = sshll.u32 %s1875_s22, 4  ;;  %s1782_s12 = int_to_ptr.vmem [resolvable:$false] %s1781_s12 }
  0x69   : > { %s1783_s9 = scalar_lea.vmem %s1782_s12, 16384  ;;  %p1784_p6 = scmp.lt.s32.totalorder %s2063_s18, %s1782_s12 }
  0x6a   : > { %p1779_p3 = pnand %p1778_p1, %p1442_p2  ;;  %p1785_p11 = scmp.lt.s32.totalorder %s1783_s9, %s1777_s21 }
  0x6c   : > { %p1780_p5 = pneg %p1779_p3  ;;  %p1786_p13 = por %p1785_p11, %p1784_p6 }
  0x6e   : > { %p1787_p0 = pnand %p1786_p13, %p1780_p5 }
  0x70   : > { %1790 = shalt.err (!%p1787_p0)
}
  0x71   : > { %s1876_s10 = smov 256   ;;  %s1877_s8 = smov 16  }
  0x72   : > { %284 = dma.hbm_to_vmem [thread:$0]  (%p1442_p2), %s2061_s17, %s2050_s19, %s2063_s18, %s2053_s20, %s1876_s10, %s1876_s10, %s1877_s8  }
  0x73 PF: > { %p2324_p12 = scmp.ne.s32.totalorder %s2321_s16, 0 }
  0x74   : > { %s2093_s11 = sand.u32 (!%p2324_p12), 1, %s1857_s27   ;;  %p2325_p7 = scmp.ne.s32.totalorder (!%p2324_p12), %s2318_s13, 0 }
  0x75   : > { %290 = sbr.rel (%p2324_p12) target bundleno = 960 (0x3c0), region = 48  ;;  %s1448_s23 = sshll.u32 (!%p2324_p12), %s2093_s11, 9 }
  0x76   : > { %s293_s24 = scalar_lea.sflag (!%p2324_p12), [#allocation4], %s2093_s11  ;;  %s2097_s25 = scalar_lea.vmem (!%p2324_p12), [#allocation3], %s1448_s23 }
  0x7c   : > { %1840 = dma.done.wait (%p2325_p7), %s293_s24, 8192  }
  0x7d   : > { %1842 = vsyncadd (%p2325_p7), %s293_s24, 4294959104  ;;  %p2326_p2 = scmp.eq.s32.totalorder %s1943_s6, 0 }
  0x7f   : > { %1844 = dma.done.wait (%p2326_p2), [#allocation7], 8192   ;;  %p2327_p8 = pmov %p2326_p2 }
  0x80   : > { %s1451_s16 = sshll.u32 %s2093_s11, 4  ;;  %s2110_s20 = smov 0  }
  0x81   : > { %1846 = vsyncadd (%p2327_p8), [#allocation7], 4294959104  ;;  %s2108_s19 = scalar_lea.vmem [#allocation9], %s1451_s16 }
  0x82 LB: >> { %v1605_v0 = vld [vmem:[#allocation6 + $0x4] ss:$8 sps:$4 sm:$0xff]   ;;  %v1607_v1 = vld [vmem:[#allocation6] ss:$8 sps:$4 sm:$0xff]   ;;  %v1608_v2 = vld [vmem:[#allocation6 + $0x14] ss:$8 sps:$4 sm:$0xff]   ;;  %s1869_s20 = sphi %s2110_s20, %s347_s20  }
  0x83   : >> { %606 = vmatprep.subr.bf16.mxu0 %v1605_v0  ;;  %v1610_v3 = vld [vmem:[#allocation6 + $0x10] ss:$8 sps:$4 sm:$0xff]   ;;  %v1611_v4 = vld [vmem:[#allocation6 + $0x24] ss:$8 sps:$4 sm:$0xff]   ;;  %v1613_v5 = vld [vmem:[#allocation6 + $0x20] ss:$8 sps:$4 sm:$0xff]  }
  0x84   : >> { %607 = vmatpush1.bf16.msra.mxu0 %v1607_v1  ;;  %v1614_v6 = vld [vmem:[#allocation6 + $0x34] ss:$8 sps:$4 sm:$0xff]   ;;  %s1452_s13 = sshll.u32 %s1869_s20, 7  ;;  %v1616_v7 = vld [vmem:[#allocation6 + $0x30] ss:$8 sps:$4 sm:$0xff]   ;;  %s1261_s23 = sld [smem:[#allocation2]] }
  0x85   : >> { %608 = vmatprep.subr.bf16.mxu0 %v1608_v2  ;;  %v1617_v8 = vld [vmem:[#allocation6 + $0x44] ss:$8 sps:$4 sm:$0xff]   ;;  %s349_s17 = sshra.s32 %s1452_s13, 3  ;;  %v1619_v9 = vld [vmem:[#allocation6 + $0x40] ss:$8 sps:$4 sm:$0xff]   ;;  %s1315_s24 = sshra.s32 %s1452_s13, 7 }
  0x86   : >> { %s1530_s18 = sshll.u32 %s349_s17, 4  ;;  %v1620_v10 = vld [vmem:[#allocation6 + $0x54] ss:$8 sps:$4 sm:$0xff]   ;;  %v1622_v11 = vld [vmem:[#allocation6 + $0x50] ss:$8 sps:$4 sm:$0xff]   ;;  %s1521_s16 = sshll.u32 %s1315_s24, 3 }
  0x87   : >> { %s2119_s30 = scalar_lea.vmem %s2097_s25, %s1530_s18 [#allocation3]  ;;  %v1623_v12 = vld [vmem:[#allocation6 + $0x64] ss:$8 sps:$4 sm:$0xff]   ;;  %v1625_v16 = vld [vmem:[#allocation6 + $0x60] ss:$8 sps:$4 sm:$0xff]   ;;  %v1626_v17 = vld [vmem:[#allocation6 + $0x74] ss:$8 sps:$4 sm:$0xff]   ;;  %s1318_s17 = scalar_lea.vmem %s2108_s19, %s1521_s16 [#allocation9] }
  0x88   : >> { %609 = vmatpush1.bf16.msra.mxu0 %v1610_v3  ;;  %v355_v13 = vld [vmem:[%s2119_s30 + $0x8] sm:$0xff]  ;;  %v357_v14 = vld [vmem:[%s2119_s30 + $0x18] sm:$0xff]  ;;  %v354_v50 = vld [vmem:[%s2119_s30] sm:$0xff]  ;;  %s347_s20 = sadd.s32 1, %s1869_s20  }
  0x89   : >> { %610 = vmatprep.subr.bf16.mxu0 %v1611_v4  ;;  %v387_v15 = vpack.c.bf16 %v357_v14, %v355_v13  ;;  %v1628_v18 = vld [vmem:[#allocation6 + $0x70] ss:$8 sps:$4 sm:$0xff]   ;;  %v1629_v19 = vld [vmem:[#allocation6 + $0x84] ss:$8 sps:$4 sm:$0xff]   ;;  %v1631_v20 = vld [vmem:[#allocation6 + $0x80] ss:$8 sps:$4 sm:$0xff]  }
  0x8a   : >> { %v1632_v21 = vld [vmem:[#allocation6 + $0x94] ss:$8 sps:$4 sm:$0xff]   ;;  %v1653_v22 = vld [vmem:[#allocation8 + $0x4] ss:$8 sps:$4 sm:$0xff]   ;;  %v1655_v23 = vld [vmem:[#allocation8] ss:$8 sps:$4 sm:$0xff]  }
  0x8b   : >> { %638 = vmatprep.mubr.bf16.mxu0 %v387_v15  ;;  %v1634_v24 = vld [vmem:[#allocation6 + $0x90] ss:$8 sps:$4 sm:$0xff]   ;;  %1035 = vmatprep.subr.bf16.mxu1 %v1653_v22  ;;  %v1656_v25 = vld [vmem:[#allocation8 + $0x14] ss:$8 sps:$4 sm:$0xff]   ;;  %v1635_v26 = vld [vmem:[#allocation6 + $0xa4] ss:$8 sps:$4 sm:$0xff]  }
  0x8c   : >> { %611 = vmatpush1.bf16.msra.mxu0 %v1613_v5  ;;  %1036 = vmatpush1.bf16.msra.mxu1 %v1655_v23  ;;  %v1658_v27 = vld [vmem:[#allocation8 + $0x10] ss:$8 sps:$4 sm:$0xff]   ;;  %v1659_v28 = vld [vmem:[#allocation8 + $0x24] ss:$8 sps:$4 sm:$0xff]   ;;  %v1637_v29 = vld [vmem:[#allocation6 + $0xa0] ss:$8 sps:$4 sm:$0xff]  }
  0x8d   : >> { %612 = vmatprep.subr.bf16.mxu0 %v1614_v6  ;;  %1037 = vmatprep.subr.bf16.mxu1 %v1656_v25  ;;  %v1638_v30 = vld [vmem:[#allocation6 + $0xb4] ss:$8 sps:$4 sm:$0xff]   ;;  %v1661_v31 = vld [vmem:[#allocation8 + $0x20] ss:$8 sps:$4 sm:$0xff]   ;;  %v1640_v33 = vld [vmem:[#allocation6 + $0xb0] ss:$8 sps:$4 sm:$0xff]  }
  0x8e   : >> { %v1662_v32 = vld [vmem:[#allocation8 + $0x34] ss:$8 sps:$4 sm:$0xff]   ;;  %v1641_v34 = vld [vmem:[#allocation6 + $0xc4] ss:$8 sps:$4 sm:$0xff]   ;;  %v1664_v35 = vld [vmem:[#allocation8 + $0x30] ss:$8 sps:$4 sm:$0xff]  }
  0x8f   : >> { %v1665_v36 = vld [vmem:[#allocation8 + $0x44] ss:$8 sps:$4 sm:$0xff]   ;;  %v1643_v37 = vld [vmem:[#allocation6 + $0xc0] ss:$8 sps:$4 sm:$0xff]   ;;  %v1644_v38 = vld [vmem:[#allocation6 + $0xd4] ss:$8 sps:$4 sm:$0xff]  }
  0x90   : >> { %613 = vmatpush1.bf16.msra.mxu0 %v1616_v7  ;;  %1038 = vmatpush1.bf16.msra.mxu1 %v1658_v27  ;;  %v1667_v39 = vld [vmem:[#allocation8 + $0x40] ss:$8 sps:$4 sm:$0xff]   ;;  %v1668_v40 = vld [vmem:[#allocation8 + $0x54] ss:$8 sps:$4 sm:$0xff]   ;;  %v1646_v41 = vld [vmem:[#allocation6 + $0xd0] ss:$8 sps:$4 sm:$0xff]  }
  0x91   : >> { %614 = vmatprep.subr.bf16.mxu0 %v1617_v8  ;;  %1039 = vmatprep.subr.bf16.mxu1 %v1659_v28  ;;  %v1670_v42 = vld [vmem:[#allocation8 + $0x50] ss:$8 sps:$4 sm:$0xff]   ;;  %v1647_v43 = vld [vmem:[#allocation6 + $0xe4] ss:$8 sps:$4 sm:$0xff]   ;;  %v1649_v45 = vld [vmem:[#allocation6 + $0xe0] ss:$8 sps:$4 sm:$0xff]  }
  0x92   : >> { %v1671_v44 = vld [vmem:[#allocation8 + $0x64] ss:$8 sps:$4 sm:$0xff]   ;;  %v1673_v46 = vld [vmem:[#allocation8 + $0x60] ss:$8 sps:$4 sm:$0xff]   ;;  %v1650_v47 = vld [vmem:[#allocation6 + $0xf4] ss:$8 sps:$4 sm:$0xff]  }
  0x93   : >> { %v1674_v48 = vld [vmem:[#allocation8 + $0x74] ss:$8 sps:$4 sm:$0xff]   ;;  %v1652_v49 = vld [vmem:[#allocation6 + $0xf0] ss:$8 sps:$4 sm:$0xff]   ;;  %v359_v53 = vld [vmem:[%s2119_s30 + $0x28] sm:$0xff]  ;;  %p344_p9 = scmp.ge.s32.totalorder %s347_s20, 2  }
  0x94   : >> { %615 = vmatpush1.bf16.msra.mxu0 %v1619_v9  ;;  %1040 = vmatpush1.bf16.msra.mxu1 %v1661_v31  ;;  %v356_v51 = vld [vmem:[%s2119_s30 + $0x10] sm:$0xff]  ;;  %v361_v54 = vld [vmem:[%s2119_s30 + $0x38] sm:$0xff]  ;;  %v1677_v55 = vld [vmem:[#allocation8 + $0x84] ss:$8 sps:$4 sm:$0xff]   ;;  %s1531_s18 = sshll.u32 (%p344_p9), %s1943_s6, 8  ;;  %s1335_s13 = sshll.u32 (%p344_p9), %s2108_s19, 4  ;;  %s1336_s13 = int_to_ptr.vmem [resolvable:$true] %s1335_s13 }
  0x95   : >> { %616 = vmatprep.subr.bf16.mxu0 %v1620_v10  ;;  %1041 = vmatprep.subr.bf16.mxu1 %v1662_v32  ;;  %v1676_v52 = vld [vmem:[#allocation8 + $0x70] ss:$8 sps:$4 sm:$0xff]   ;;  %v386_v56 = vpack.c.bf16 %v356_v51, %v354_v50  ;;  %v389_v57 = vpack.c.bf16 %v361_v54, %v359_v53  ;;  %v1679_v58 = vld [vmem:[#allocation8 + $0x80] ss:$8 sps:$4 sm:$0xff]   ;;  %v1680_v59 = vld [vmem:[#allocation8 + $0x94] ss:$8 sps:$4 sm:$0xff]   ;;  %s2262_s22 = scalar_lea.hbm (%p344_p9), %s2308_s7, %s1531_s18 }
  0x96   : >> { %v358_v60 = vld [vmem:[%s2119_s30 + $0x20] sm:$0xff]  ;;  %v360_v61 = vld [vmem:[%s2119_s30 + $0x30] sm:$0xff]  ;;  %v363_v63 = vld [vmem:[%s2119_s30 + $0x48] sm:$0xff]  ;;  %s1321_s12 = scalar_lea.sflag (%p344_p9), [#allocation5], %s2093_s11  ;;  %s1791_s9 = scalar_lea.vmem (%p344_p9), %s1336_s13, 256 }
  0x97   : >> { %v1682_v62 = vld [vmem:[#allocation8 + $0x90] ss:$8 sps:$4 sm:$0xff]   ;;  %v1683_v1 = vld [vmem:[#allocation8 + $0xa4] ss:$8 sps:$4 sm:$0xff]   ;;  %v388_v2 = vpack.c.bf16 %v360_v61, %v358_v60  ;;  %v1685_v4 = vld [vmem:[#allocation8 + $0xa0] ss:$8 sps:$4 sm:$0xff]   ;;  %p1792_p10 = scmp.ne.s32.totalorder (%p344_p9), %s1336_s13, %s1791_s9 }
  0x98   : >> { %617 = vmatpush1.bf16.msra.mxu0 %v1622_v11  ;;  %1042 = vmatpush1.bf16.msra.mxu1 %v1664_v35  ;;  %v365_v0 = vld [vmem:[%s2119_s30 + $0x58] sm:$0xff]  ;;  %v362_v6 = vld [vmem:[%s2119_s30 + $0x40] sm:$0xff]  ;;  %v364_v7 = vld [vmem:[%s2119_s30 + $0x50] sm:$0xff]  ;;  %p2328_p1 = scmp.ne.s32.totalorder (%p344_p9), %s2319_s14, 0  ;;  %s1878_s20 = smov (%p344_p9), [#allocation9]  }
  0x99   : >> { %618 = vmatprep.subr.bf16.mxu0 %v1623_v12  ;;  %1043 = vmatprep.subr.bf16.mxu1 %v1665_v36  ;;  %v391_v3 = vpack.c.bf16 %v365_v0, %v363_v63  ;;  %v1686_v5 = vld [vmem:[#allocation8 + $0xb4] ss:$8 sps:$4 sm:$0xff]   ;;  %v1688_v8 = vld [vmem:[#allocation8 + $0xb0] ss:$8 sps:$4 sm:$0xff]   ;;  %v367_v9 = vld [vmem:[%s2119_s30 + $0x68] sm:$0xff]  ;;  %v390_v12 = vpack.c.bf16 %v364_v7, %v362_v6  ;;  %s1795_s10 = sshll.u32 (%p344_p9), %s1878_s20, 4  ;;  %s1796_s10 = int_to_ptr.vmem [resolvable:$false] %s1795_s10 }
  0x9a   : >> { %v369_v10 = vld [vmem:[%s2119_s30 + $0x78] sm:$0xff]  ;;  %v1689_v11 = vld [vmem:[#allocation8 + $0xc4] ss:$8 sps:$4 sm:$0xff]   ;;  %v1691_v14 = vld [vmem:[#allocation8 + $0xc0] ss:$8 sps:$4 sm:$0xff]   ;;  %p1793_p3 = pnand (%p344_p9), %p1792_p10, %p2328_p1  ;;  %s1797_s25 = scalar_lea.vmem (%p344_p9), %s1796_s10, 512 }
  0x9b   : >> { %v393_v13 = vpack.c.bf16 %v369_v10, %v367_v9  ;;  %v366_v15 = vld [vmem:[%s2119_s30 + $0x60] sm:$0xff]  ;;  %v372_v22 = vld [vmem:[%s2119_s30 + $0x90] sm:$0xff]  ;;  %v375_v23 = vld [vmem:[%s2119_s30 + $0xa8] sm:$0xff]  ;;  %p1798_p6 = scmp.lt.s32.totalorder (%p344_p9), %s1336_s13, %s1796_s10  ;;  %p1799_p11 = scmp.lt.s32.totalorder (%p344_p9), %s1797_s25, %s1791_s9 }
  0x9c   : >> { %619 = vmatpush1.bf16.msra.mxu0 %v1625_v16  ;;  %1044 = vmatpush1.bf16.msra.mxu1 %v1667_v39  ;;  %v368_v16 = vld [vmem:[%s2119_s30 + $0x70] sm:$0xff]  ;;  %v374_v27 = vld [vmem:[%s2119_s30 + $0xa0] sm:$0xff]  ;;  %v383_v35 = vld [vmem:[%s2119_s30 + $0xe8] sm:$0xff]  ;;  %p1794_p5 = pneg (%p344_p9), %p1793_p3 }
  0x9d   : >> { %620 = vmatprep.subr.bf16.mxu0 %v1626_v17  ;;  %1045 = vmatprep.subr.bf16.mxu1 %v1668_v40  ;;  %v371_v17 = vld [vmem:[%s2119_s30 + $0x88] sm:$0xff]  ;;  %v376_v28 = vld [vmem:[%s2119_s30 + $0xb0] sm:$0xff]  ;;  %v385_v36 = vld [vmem:[%s2119_s30 + $0xf8] sm:$0xff]  ;;  %p1800_p13 = por (%p344_p9), %p1799_p11, %p1798_p6 }
  0x9e   : >> { %v396_v31 = vpack.c.bf16 %v376_v28, %v374_v27  ;;  %v382_v39 = vld [vmem:[%s2119_s30 + $0xe0] sm:$0xff]  ;;  %v384_v40 = vld [vmem:[%s2119_s30 + $0xf0] sm:$0xff] }
  0x9f   : >> { %v434_v51 = vld [vmem:[%s2303_s2] sm:$0x3]  ;;  %p1801_p0 = pnand (%p344_p9), %p1800_p13, %p1794_p5 }
  0xa0   : >> { %621 = vmatpush1.bf16.msra.mxu0 %v1628_v18  ;;  %1046 = vmatpush1.bf16.msra.mxu1 %v1670_v42  ;;  %v373_v18 = vld [vmem:[%s2119_s30 + $0x98] sm:$0xff] }
  0xa1   : >> { %622 = vmatprep.subr.bf16.mxu0 %v1629_v19  ;;  %1047 = vmatprep.subr.bf16.mxu1 %v1671_v44  ;;  %v392_v19 = vpack.c.bf16 %v368_v16, %v366_v15  ;;  %v1692_v42 = vld [vmem:[#allocation8 + $0xd4] ss:$8 sps:$4 sm:$0xff]   ;;  %v1695_v44 = vld [vmem:[#allocation8 + $0xe4] ss:$8 sps:$4 sm:$0xff]  }
  0xa4   : >> { %623 = vmatpush1.bf16.msra.mxu0 %v1631_v20  ;;  %1048 = vmatpush1.bf16.msra.mxu1 %v1673_v46  ;;  %v395_v20 = vpack.c.bf16 %v373_v18, %v371_v17  ;;  %v1698_v46 = vld [vmem:[#allocation8 + $0xf4] ss:$8 sps:$4 sm:$0xff]  }
  0xa5   : >> { %624 = vmatprep.subr.bf16.mxu0 %v1632_v21  ;;  %1049 = vmatprep.subr.bf16.mxu1 %v1674_v48  ;;  %v370_v21 = vld [vmem:[%s2119_s30 + $0x80] sm:$0xff]  ;;  %v436_v48 = vlaneseq }
  0xa6   : >> { %v394_v25 = vpack.c.bf16 %v372_v22, %v370_v21 }
  0xa8   : >> { %625 = vmatpush1.bf16.msra.mxu0 %v1634_v24  ;;  %1050 = vmatpush1.bf16.msra.mxu1 %v1676_v52  ;;  %v377_v24 = vld [vmem:[%s2119_s30 + $0xb8] sm:$0xff] }
  0xa9   : >> { %626 = vmatprep.subr.bf16.mxu0 %v1635_v26  ;;  %1051 = vmatprep.subr.bf16.mxu1 %v1677_v55  ;;  %v397_v26 = vpack.c.bf16 %v377_v24, %v375_v23 }
  0xac   : >> { %627 = vmatpush1.bf16.msra.mxu0 %v1637_v29  ;;  %1052 = vmatpush1.bf16.msra.mxu1 %v1679_v58  ;;  %v379_v29 = vld [vmem:[%s2119_s30 + $0xc8] sm:$0xff] }
  0xad   : >> { %628 = vmatprep.subr.bf16.mxu0 %v1638_v30  ;;  %1053 = vmatprep.subr.bf16.mxu1 %v1680_v59  ;;  %v381_v30 = vld [vmem:[%s2119_s30 + $0xd8] sm:$0xff] }
  0xae   : >> { %v399_v32 = vpack.c.bf16 %v381_v30, %v379_v29 }
  0xb0   : >> { %629 = vmatpush1.bf16.msra.mxu0 %v1640_v33  ;;  %1054 = vmatpush1.bf16.msra.mxu1 %v1682_v62  ;;  %v378_v33 = vld [vmem:[%s2119_s30 + $0xc0] sm:$0xff] }
  0xb1   : >> { %630 = vmatprep.subr.bf16.mxu0 %v1641_v34  ;;  %1055 = vmatprep.subr.bf16.mxu1 %v1683_v1  ;;  %v380_v34 = vld [vmem:[%s2119_s30 + $0xd0] sm:$0xff] }
  0xb4   : >> { %631 = vmatpush1.bf16.msra.mxu0 %v1643_v37  ;;  %1056 = vmatpush1.bf16.msra.mxu1 %v1685_v4  ;;  %v398_v37 = vpack.c.bf16 %v380_v34, %v378_v33 }
  0xb5   : >> { %632 = vmatprep.subr.bf16.mxu0 %v1644_v38  ;;  %1057 = vmatprep.subr.bf16.mxu1 %v1686_v5  ;;  %v401_v38 = vpack.c.bf16 %v385_v36, %v383_v35 }
  0xb8   : >> { %633 = vmatpush1.bf16.msra.mxu0 %v1646_v41  ;;  %1058 = vmatpush1.bf16.msra.mxu1 %v1688_v8  ;;  %v400_v41 = vpack.c.bf16 %v384_v40, %v382_v39 }
  0xb9   : >> { %634 = vmatprep.subr.bf16.mxu0 %v1647_v43  ;;  %1059 = vmatprep.subr.bf16.mxu1 %v1689_v11  ;;  %v1694_v43 = vld [vmem:[#allocation8 + $0xd0] ss:$8 sps:$4 sm:$0xff]  }
  0xbc   : >> { %635 = vmatpush1.bf16.msra.mxu0 %v1649_v45  ;;  %1060 = vmatpush1.bf16.msra.mxu1 %v1691_v14  ;;  %v1697_v45 = vld [vmem:[#allocation8 + $0xe0] ss:$8 sps:$4 sm:$0xff]  }
  0xbd   : >> { %636 = vmatprep.subr.bf16.mxu0 %v1650_v47  ;;  %1061 = vmatprep.subr.bf16.mxu1 %v1692_v42  ;;  %v1700_v47 = vld [vmem:[#allocation8 + $0xf0] ss:$8 sps:$4 sm:$0xff]  }
  0xc0   : >> { %637 = vmatpush1.bf16.msra.mxu0 %v1652_v49  ;;  %1062 = vmatpush1.bf16.msra.mxu1 %v1694_v43  ;;  %v2153_v49 = vshrl.u32 %v436_v48, 7 }
  0xc1   : >> { %1063 = vmatprep.subr.bf16.mxu1 %v1695_v44 }
  0xc2   : >> { %v438_v50 = vsub.s32 0, %v2153_v49  ;;  %v442_v52 = vsub.s32 1, %v2153_v49 }
  0xc3   : >> { %639 = vmatmul.mubr.bf16.vlgmr.msra.gmra.mrb[0].mxu0 %v386_v56 }
  0xc4   : >> { %648 = vmatprep.mubr.bf16.mxu0 %v389_v57  ;;  %1064 = vmatpush1.bf16.msra.mxu1 %v1697_v45  ;;  %v2162_v53 = vrot.slane %v434_v51, %v438_v50  ;;  %v2166_v54 = vrot.slane %v434_v51, %v442_v52 }
  0xc5   : >> { %1065 = vmatprep.subr.bf16.mxu1 %v1698_v46 }
  0xc8   : >> { %1066 = vmatpush1.bf16.msra.mxu1 %v1700_v47 }
  0xcb   : >> { %649 = vmatmul.mubr.bf16.gmra.mrb[4].mxu0 %v388_v2 }
  0xcc   : >> { %658 = vmatprep.mubr.bf16.mxu0 %v391_v3 }
  0xd3   : >> { %659 = vmatmul.mubr.bf16.gmra.mrb[8].mxu0 %v390_v12 }
  0xd4   : >> { %668 = vmatprep.mubr.bf16.mxu0 %v393_v13 }
  0xdb   : >> { %669 = vmatmul.mubr.bf16.gmra.mrb[12].mxu0 %v392_v19 }
  0xdc   : >> { %678 = vmatprep.mubr.bf16.mxu0 %v395_v20 }
  0xe3   : >> { %679 = vmatmul.mubr.bf16.gmra.mrb[16].mxu0 %v394_v25 }
  0xe4   : >> { %688 = vmatprep.mubr.bf16.mxu0 %v397_v26 }
  0xeb   : >> { %689 = vmatmul.mubr.bf16.gmra.mrb[20].mxu0 %v396_v31 }
  0xec   : >> { %698 = vmatprep.mubr.bf16.mxu0 %v399_v32 }
  0xf3   : >> { %699 = vmatmul.mubr.bf16.gmra.mrb[24].mxu0 %v398_v37 }
  0xf4   : >> { %708 = vmatprep.mubr.bf16.mxu0 %v401_v38 }
  0xfb   : >> { %709 = vmatmul.mubr.bf16.gmra.mrb[28].mxu0 %v400_v41 }
 0x196   : >> { %v640_v55 = vpop.f32.mrb[0].mxu0 }
 0x197   : >> { %v641_v56 = vadd.f32 %v640_v55, %v2162_v53  ;;  %v642_v57 = vpop.f32.mrb[1].mxu0 }
 0x198   : >> { %v643_v58 = vadd.f32 %v642_v57, %v2166_v54  ;;  %v644_v59 = vpop.f32.mrb[2].mxu0 }
 0x199   : >> { %v751_v60 = vmul.f32 0.2, %v641_v56  ;;  %v645_v61 = vadd.f32 %v644_v59, %v2162_v53  ;;  %v646_v62 = vpop.f32.mrb[3].mxu0  ;;  %vm719_vm0 = vcmp.gt.f32.partialorder %v641_v56, 0.0 }
 0x19a   : >> { %v752_v63 = vmul.f32 0.2, %v643_v58  ;;  %v647_v0 = vadd.f32 %v646_v62, %v2166_v54  ;;  %vm720_vm2 = vcmp.gt.f32.partialorder %v643_v58, 0.0 }
 0x19b   : >> { %vm721_vm1 = vcmp.gt.f32.partialorder %v645_v61, 0.0  ;;  %v753_v1 = vmul.f32 0.2, %v645_v61  ;;  %v783_v3 = vsel %vm719_vm0, %v641_v56, %v751_v60 }
 0x19c   : >> { %v754_v2 = vmul.f32 0.2, %v647_v0  ;;  %vm722_vm3 = vcmp.gt.f32.partialorder %v647_v0, 0.0  ;;  %v784_v6 = vsel %vm720_vm2, %v643_v58, %v752_v63 }
 0x19d   : >> { %v785_v4 = vsel %vm721_vm1, %v645_v61, %v753_v1 }
 0x19e   : >> { %v650_v5 = vpop.f32.mrb[4].mxu0  ;;  %v786_v7 = vsel %vm722_vm3, %v647_v0, %v754_v2  ;;  %v815_v8 = vpack.c.bf16 %v785_v4, %v783_v3 }
 0x19f   : >> { %v651_v9 = vadd.f32 %v650_v5, %v2162_v53  ;;  %v652_v10 = vpop.f32.mrb[5].mxu0  ;;  %v816_v11 = vpack.c.bf16 %v786_v7, %v784_v6 }
 0x1a0   : >> { %v653_v12 = vadd.f32 %v652_v10, %v2166_v54  ;;  %v654_v13 = vpop.f32.mrb[6].mxu0 }
 0x1a1   : >> { %v755_v14 = vmul.f32 0.2, %v651_v9  ;;  %v655_v15 = vadd.f32 %v654_v13, %v2162_v53  ;;  %v656_v16 = vpop.f32.mrb[7].mxu0  ;;  %1067 = vmatprep.mubr.bf16.mxu1 %v816_v11  ;;  %vm723_vm4 = vcmp.gt.f32.partialorder %v651_v9, 0.0 }
 0x1a2   : >> { %v756_v17 = vmul.f32 0.2, %v653_v12  ;;  %v657_v18 = vadd.f32 %v656_v16, %v2166_v54  ;;  %1068 = vmatmul.mubr.bf16.vlgmr.msra.gmra.mrb[0].mxu1 %v815_v8  ;;  %vm724_vm5 = vcmp.gt.f32.partialorder %v653_v12, 0.0 }
 0x1a3   : >> { %vm725_vm6 = vcmp.gt.f32.partialorder %v655_v15, 0.0  ;;  %v757_v19 = vmul.f32 0.2, %v655_v15  ;;  %v787_v21 = vsel %vm723_vm4, %v651_v9, %v755_v14 }
 0x1a4   : >> { %vm726_vm7 = vcmp.gt.f32.partialorder %v657_v18, 0.0  ;;  %v758_v20 = vmul.f32 0.2, %v657_v18  ;;  %v788_v24 = vsel %vm724_vm5, %v653_v12, %v756_v17 }
 0x1a5   : >> { %v789_v22 = vsel %vm725_vm6, %v655_v15, %v757_v19 }
 0x1a6   : >> { %v660_v23 = vpop.f32.mrb[8].mxu0  ;;  %v790_v25 = vsel %vm726_vm7, %v657_v18, %v758_v20  ;;  %v817_v26 = vpack.c.bf16 %v789_v22, %v787_v21 }
 0x1a7   : >> { %v661_v27 = vadd.f32 %v660_v23, %v2162_v53  ;;  %v662_v28 = vpop.f32.mrb[9].mxu0  ;;  %v818_v29 = vpack.c.bf16 %v790_v25, %v788_v24 }
 0x1a8   : >> { %v663_v30 = vadd.f32 %v662_v28, %v2166_v54  ;;  %v664_v31 = vpop.f32.mrb[10].mxu0 }
 0x1a9   : >> { %v759_v32 = vmul.f32 0.2, %v661_v27  ;;  %v665_v33 = vadd.f32 %v664_v31, %v2162_v53  ;;  %v666_v34 = vpop.f32.mrb[11].mxu0  ;;  %1077 = vmatprep.mubr.bf16.mxu1 %v818_v29  ;;  %vm727_vm8 = vcmp.gt.f32.partialorder %v661_v27, 0.0 }
 0x1aa   : >> { %v760_v35 = vmul.f32 0.2, %v663_v30  ;;  %v667_v36 = vadd.f32 %v666_v34, %v2166_v54  ;;  %1078 = vmatmul.mubr.bf16.gmra.mrb[4].mxu1 %v817_v26  ;;  %vm728_vm9 = vcmp.gt.f32.partialorder %v663_v30, 0.0 }
 0x1ab   : >> { %vm729_vm10 = vcmp.gt.f32.partialorder %v665_v33, 0.0  ;;  %v761_v37 = vmul.f32 0.2, %v665_v33  ;;  %v791_v39 = vsel %vm727_vm8, %v661_v27, %v759_v32 }
 0x1ac   : >> { %vm730_vm11 = vcmp.gt.f32.partialorder %v667_v36, 0.0  ;;  %v762_v38 = vmul.f32 0.2, %v667_v36  ;;  %v792_v42 = vsel %vm728_vm9, %v663_v30, %v760_v35 }
 0x1ad   : >> { %v793_v40 = vsel %vm729_vm10, %v665_v33, %v761_v37 }
 0x1ae   : >> { %v670_v41 = vpop.f32.mrb[12].mxu0  ;;  %v794_v43 = vsel %vm730_vm11, %v667_v36, %v762_v38  ;;  %v819_v44 = vpack.c.bf16 %v793_v40, %v791_v39 }
 0x1af   : >> { %v671_v45 = vadd.f32 %v670_v41, %v2162_v53  ;;  %v672_v46 = vpop.f32.mrb[13].mxu0  ;;  %v820_v47 = vpack.c.bf16 %v794_v43, %v792_v42 }
 0x1b0   : >> { %v673_v48 = vadd.f32 %v672_v46, %v2166_v54  ;;  %v674_v51 = vpop.f32.mrb[14].mxu0 }
 0x1b1   : >> { %v763_v55 = vmul.f32 0.2, %v671_v45  ;;  %v675_v56 = vadd.f32 %v674_v51, %v2162_v53  ;;  %v676_v57 = vpop.f32.mrb[15].mxu0  ;;  %1087 = vmatprep.mubr.bf16.mxu1 %v820_v47  ;;  %vm731_vm12 = vcmp.gt.f32.partialorder %v671_v45, 0.0 }
 0x1b2   : >> { %v764_v58 = vmul.f32 0.2, %v673_v48  ;;  %v677_v59 = vadd.f32 %v676_v57, %v2166_v54  ;;  %1088 = vmatmul.mubr.bf16.gmra.mrb[8].mxu1 %v819_v44  ;;  %vm732_vm13 = vcmp.gt.f32.partialorder %v673_v48, 0.0 }
 0x1b3   : >> { %vm733_vm14 = vcmp.gt.f32.partialorder %v675_v56, 0.0  ;;  %v765_v60 = vmul.f32 0.2, %v675_v56  ;;  %v795_v62 = vsel %vm731_vm12, %v671_v45, %v763_v55 }
 0x1b4   : >> { %vm734_vm15 = vcmp.gt.f32.partialorder %v677_v59, 0.0  ;;  %v766_v61 = vmul.f32 0.2, %v677_v59  ;;  %v796_v1 = vsel %vm732_vm13, %v673_v48, %v764_v58 }
 0x1b5   : >> { %v797_v63 = vsel %vm733_vm14, %v675_v56, %v765_v60 }
 0x1b6   : >> { %v680_v0 = vpop.f32.mrb[16].mxu0  ;;  %v798_v2 = vsel %vm734_vm15, %v677_v59, %v766_v61  ;;  %v821_v3 = vpack.c.bf16 %v797_v63, %v795_v62 }
 0x1b7   : >> { %v681_v4 = vadd.f32 %v680_v0, %v2162_v53  ;;  %v682_v5 = vpop.f32.mrb[17].mxu0  ;;  %v822_v6 = vpack.c.bf16 %v798_v2, %v796_v1 }
 0x1b8   : >> { %v683_v7 = vadd.f32 %v682_v5, %v2166_v54  ;;  %v684_v8 = vpop.f32.mrb[18].mxu0 }
 0x1b9   : >> { %v767_v9 = vmul.f32 0.2, %v681_v4  ;;  %v685_v10 = vadd.f32 %v684_v8, %v2162_v53  ;;  %v686_v11 = vpop.f32.mrb[19].mxu0  ;;  %1097 = vmatprep.mubr.bf16.mxu1 %v822_v6  ;;  %vm735_vm0 = vcmp.gt.f32.partialorder %v681_v4, 0.0 }
 0x1ba   : >> { %v768_v12 = vmul.f32 0.2, %v683_v7  ;;  %v687_v13 = vadd.f32 %v686_v11, %v2166_v54  ;;  %1098 = vmatmul.mubr.bf16.gmra.mrb[12].mxu1 %v821_v3  ;;  %vm736_vm1 = vcmp.gt.f32.partialorder %v683_v7, 0.0 }
 0x1bb   : >> { %vm737_vm2 = vcmp.gt.f32.partialorder %v685_v10, 0.0  ;;  %v769_v14 = vmul.f32 0.2, %v685_v10  ;;  %v799_v16 = vsel %vm735_vm0, %v681_v4, %v767_v9 }
 0x1bc   : >> { %vm738_vm3 = vcmp.gt.f32.partialorder %v687_v13, 0.0  ;;  %v770_v15 = vmul.f32 0.2, %v687_v13  ;;  %v800_v19 = vsel %vm736_vm1, %v683_v7, %v768_v12 }
 0x1bd   : >> { %v801_v17 = vsel %vm737_vm2, %v685_v10, %v769_v14 }
 0x1be   : >> { %v690_v18 = vpop.f32.mrb[20].mxu0  ;;  %v802_v20 = vsel %vm738_vm3, %v687_v13, %v770_v15  ;;  %v823_v21 = vpack.c.bf16 %v801_v17, %v799_v16  ;;  %v863_v17 = vld [vmem:[%s2305_s4] sm:$0x3] }
 0x1bf   : >> { %v691_v22 = vadd.f32 %v690_v18, %v2162_v53  ;;  %v692_v23 = vpop.f32.mrb[21].mxu0  ;;  %v824_v24 = vpack.c.bf16 %v802_v20, %v800_v19  ;;  %v2212_v18 = vrot.slane %v863_v17, %v438_v50  ;;  %v2216_v19 = vrot.slane %v863_v17, %v442_v52 }
 0x1c0   : >> { %v693_v25 = vadd.f32 %v692_v23, %v2166_v54  ;;  %v694_v26 = vpop.f32.mrb[22].mxu0 }
 0x1c1   : >> { %v771_v27 = vmul.f32 0.2, %v691_v22  ;;  %v695_v28 = vadd.f32 %v694_v26, %v2162_v53  ;;  %v696_v29 = vpop.f32.mrb[23].mxu0  ;;  %1107 = vmatprep.mubr.bf16.mxu1 %v824_v24  ;;  %vm739_vm4 = vcmp.gt.f32.partialorder %v691_v22, 0.0 }
 0x1c2   : >> { %v772_v30 = vmul.f32 0.2, %v693_v25  ;;  %v697_v31 = vadd.f32 %v696_v29, %v2166_v54  ;;  %1108 = vmatmul.mubr.bf16.gmra.mrb[16].mxu1 %v823_v21  ;;  %vm740_vm5 = vcmp.gt.f32.partialorder %v693_v25, 0.0 }
 0x1c3   : >> { %vm741_vm6 = vcmp.gt.f32.partialorder %v695_v28, 0.0  ;;  %v773_v32 = vmul.f32 0.2, %v695_v28  ;;  %v803_v34 = vsel %vm739_vm4, %v691_v22, %v771_v27 }
 0x1c4   : >> { %vm742_vm7 = vcmp.gt.f32.partialorder %v697_v31, 0.0  ;;  %v774_v33 = vmul.f32 0.2, %v697_v31  ;;  %v804_v37 = vsel %vm740_vm5, %v693_v25, %v772_v30 }
 0x1c5   : >> { %v805_v35 = vsel %vm741_vm6, %v695_v28, %v773_v32 }
 0x1c6   : >> { %v700_v36 = vpop.f32.mrb[24].mxu0  ;;  %v806_v38 = vsel %vm742_vm7, %v697_v31, %v774_v33  ;;  %v825_v39 = vpack.c.bf16 %v805_v35, %v803_v34 }
 0x1c7   : >> { %v701_v40 = vadd.f32 %v700_v36, %v2162_v53  ;;  %v702_v41 = vpop.f32.mrb[25].mxu0  ;;  %v826_v42 = vpack.c.bf16 %v806_v38, %v804_v37 }
 0x1c8   : >> { %v703_v43 = vadd.f32 %v702_v41, %v2166_v54  ;;  %v704_v44 = vpop.f32.mrb[26].mxu0 }
 0x1c9   : >> { %v775_v45 = vmul.f32 0.2, %v701_v40  ;;  %v705_v46 = vadd.f32 %v704_v44, %v2162_v53  ;;  %v706_v47 = vpop.f32.mrb[27].mxu0  ;;  %1117 = vmatprep.mubr.bf16.mxu1 %v826_v42  ;;  %vm743_vm8 = vcmp.gt.f32.partialorder %v701_v40, 0.0 }
 0x1ca   : >> { %v776_v48 = vmul.f32 0.2, %v703_v43  ;;  %v707_v51 = vadd.f32 %v706_v47, %v2166_v54  ;;  %1118 = vmatmul.mubr.bf16.gmra.mrb[20].mxu1 %v825_v39  ;;  %vm744_vm9 = vcmp.gt.f32.partialorder %v703_v43, 0.0 }
 0x1cb   : >> { %vm745_vm10 = vcmp.gt.f32.partialorder %v705_v46, 0.0  ;;  %v777_v55 = vmul.f32 0.2, %v705_v46  ;;  %v807_v57 = vsel %vm743_vm8, %v701_v40, %v775_v45 }
 0x1cc   : >> { %vm746_vm11 = vcmp.gt.f32.partialorder %v707_v51, 0.0  ;;  %v778_v56 = vmul.f32 0.2, %v707_v51  ;;  %v808_v60 = vsel %vm744_vm9, %v703_v43, %v776_v48 }
 0x1cd   : >> { %v809_v58 = vsel %vm745_vm10, %v705_v46, %v777_v55 }
 0x1ce   : >> { %v710_v59 = vpop.f32.mrb[28].mxu0  ;;  %v810_v61 = vsel %vm746_vm11, %v707_v51, %v778_v56  ;;  %v827_v62 = vpack.c.bf16 %v809_v58, %v807_v57 }
 0x1cf   : >> { %v711_v63 = vadd.f32 %v710_v59, %v2162_v53  ;;  %v712_v0 = vpop.f32.mrb[29].mxu0  ;;  %v828_v1 = vpack.c.bf16 %v810_v61, %v808_v60 }
 0x1d0   : >> { %v713_v2 = vadd.f32 %v712_v0, %v2166_v54  ;;  %v714_v3 = vpop.f32.mrb[30].mxu0 }
 0x1d1   : >> { %v779_v4 = vmul.f32 0.2, %v711_v63  ;;  %v715_v5 = vadd.f32 %v714_v3, %v2162_v53  ;;  %v716_v6 = vpop.f32.mrb[31].mxu0  ;;  %1127 = vmatprep.mubr.bf16.mxu1 %v828_v1  ;;  %vm747_vm12 = vcmp.gt.f32.partialorder %v711_v63, 0.0  ;;  %v2203_v53 = vld [vmem:[%s2306_s5] sm:$0xff] }
 0x1d2   : >> { %v780_v7 = vmul.f32 0.2, %v713_v2  ;;  %v717_v8 = vadd.f32 %v716_v6, %v2166_v54  ;;  %1128 = vmatmul.mubr.bf16.gmra.mrb[24].mxu1 %v827_v62  ;;  %vm748_vm13 = vcmp.gt.f32.partialorder %v713_v2, 0.0  ;;  %v1520_v54 = vcombine.high %v2203_v53, %v2203_v53 }
 0x1d3   : >> { %vm749_vm14 = vcmp.gt.f32.partialorder %v715_v5, 0.0  ;;  %v781_v9 = vmul.f32 0.2, %v715_v5  ;;  %v811_v11 = vsel %vm747_vm12, %v711_v63, %v779_v4 }
 0x1d4   : >> { %vm750_vm15 = vcmp.gt.f32.partialorder %v717_v8, 0.0  ;;  %v782_v10 = vmul.f32 0.2, %v717_v8  ;;  %v812_v13 = vsel %vm748_vm13, %v713_v2, %v780_v7  ;;  %1302 = vmatprep.mubr.bf16.mxu0 %v1520_v54 }
 0x1d5   : >> { %v813_v12 = vsel %vm749_vm14, %v715_v5, %v781_v9 }
 0x1d6   : >> { %v814_v14 = vsel %vm750_vm15, %v717_v8, %v782_v10  ;;  %v829_v15 = vpack.c.bf16 %v813_v12, %v811_v11 }
 0x1d7   : >> { %v830_v16 = vpack.c.bf16 %v814_v14, %v812_v13 }
 0x1d9   : >> { %1137 = vmatprep.mubr.bf16.mxu1 %v830_v16 }
 0x1da   : >> { %1138 = vmatmul.mubr.bf16.gmra.mrb[28].mxu1 %v829_v15 }
 0x275   : >> { %v1069_v20 = vpop.f32.mrb[0].mxu1 }
 0x276   : >> { %v1070_v21 = vadd.f32 %v1069_v20, %v2212_v18  ;;  %v1071_v22 = vpop.f32.mrb[1].mxu1 }
 0x277   : >> { %v1072_v23 = vadd.f32 %v1071_v22, %v2216_v19  ;;  %v1073_v24 = vpop.f32.mrb[2].mxu1 }
 0x278   : >> { %v1180_v25 = vmul.f32 0.2, %v1070_v21  ;;  %v1074_v26 = vadd.f32 %v1073_v24, %v2212_v18  ;;  %v1075_v27 = vpop.f32.mrb[3].mxu1  ;;  %vm1148_vm0 = vcmp.gt.f32.partialorder %v1070_v21, 0.0 }
 0x279   : >> { %v1181_v28 = vmul.f32 0.2, %v1072_v23  ;;  %v1076_v50 = vadd.f32 %v1075_v27, %v2216_v19  ;;  %vm1149_vm1 = vcmp.gt.f32.partialorder %v1072_v23, 0.0 }
 0x27a   : >> { %vm1150_vm2 = vcmp.gt.f32.partialorder %v1074_v26, 0.0  ;;  %v1182_v49 = vmul.f32 0.2, %v1074_v26  ;;  %v1212_v29 = vsel %vm1148_vm0, %v1070_v21, %v1180_v25 }
 0x27b   : >> { %vm1151_vm3 = vcmp.gt.f32.partialorder %v1076_v50, 0.0  ;;  %v1183_v52 = vmul.f32 0.2, %v1076_v50  ;;  %v1213_v33 = vsel %vm1149_vm1, %v1072_v23, %v1181_v28 }
 0x27c   : >> { %v1214_v30 = vsel %vm1150_vm2, %v1074_v26, %v1182_v49 }
 0x27d   : >> { %v1245_v31 = vpack.c.bf16 %v1214_v30, %v1212_v29  ;;  %v1079_v32 = vpop.f32.mrb[4].mxu1  ;;  %v1215_v34 = vsel %vm1151_vm3, %v1076_v50, %v1183_v52 }
 0x27e   : >> { %v1080_v35 = vadd.f32 %v1079_v32, %v2212_v18  ;;  %v1081_v36 = vpop.f32.mrb[5].mxu1  ;;  %v1246_v37 = vpack.c.bf16 %v1215_v34, %v1213_v33 }
 0x27f   : >> { %v1082_v38 = vadd.f32 %v1081_v36, %v2216_v19  ;;  %v1083_v39 = vpop.f32.mrb[6].mxu1 }
 0x280   : >> { %v1184_v40 = vmul.f32 0.2, %v1080_v35  ;;  %v1084_v41 = vadd.f32 %v1083_v39, %v2212_v18  ;;  %v1085_v42 = vpop.f32.mrb[7].mxu1  ;;  %1270 = vmatprep.subr.bf16.mxu0 %v1246_v37  ;;  %vm1152_vm4 = vcmp.gt.f32.partialorder %v1080_v35, 0.0 }
 0x281   : >> { %v1185_v43 = vmul.f32 0.2, %v1082_v38  ;;  %v1086_v44 = vadd.f32 %v1085_v42, %v2216_v19  ;;  %1271 = vmatpush1.bf16.xpose.msra.mxu0 %v1245_v31  ;;  %vm1153_vm5 = vcmp.gt.f32.partialorder %v1082_v38, 0.0 }
 0x282   : >> { %vm1154_vm6 = vcmp.gt.f32.partialorder %v1084_v41, 0.0  ;;  %v1186_v45 = vmul.f32 0.2, %v1084_v41  ;;  %v1216_v47 = vsel %vm1152_vm4, %v1080_v35, %v1184_v40 }
 0x283   : >> { %vm1155_vm7 = vcmp.gt.f32.partialorder %v1086_v44, 0.0  ;;  %v1187_v46 = vmul.f32 0.2, %v1086_v44  ;;  %v1217_v56 = vsel %vm1153_vm5, %v1082_v38, %v1185_v43 }
 0x284   : >> { %v1218_v48 = vsel %vm1154_vm6, %v1084_v41, %v1186_v45 }
 0x285   : >> { %v1247_v51 = vpack.c.bf16 %v1218_v48, %v1216_v47  ;;  %v1089_v55 = vpop.f32.mrb[8].mxu1  ;;  %v1219_v57 = vsel %vm1155_vm7, %v1086_v44, %v1187_v46 }
 0x286   : >> { %v1090_v58 = vadd.f32 %v1089_v55, %v2212_v18  ;;  %v1091_v59 = vpop.f32.mrb[9].mxu1  ;;  %v1248_v60 = vpack.c.bf16 %v1219_v57, %v1217_v56 }
 0x287   : >> { %v1092_v61 = vadd.f32 %v1091_v59, %v2216_v19  ;;  %v1093_v62 = vpop.f32.mrb[10].mxu1 }
 0x288   : >> { %v1188_v63 = vmul.f32 0.2, %v1090_v58  ;;  %v1094_v0 = vadd.f32 %v1093_v62, %v2212_v18  ;;  %v1095_v1 = vpop.f32.mrb[11].mxu1  ;;  %1272 = vmatprep.subr.bf16.mxu0 %v1248_v60  ;;  %vm1156_vm8 = vcmp.gt.f32.partialorder %v1090_v58, 0.0 }
 0x289   : >> { %v1189_v2 = vmul.f32 0.2, %v1092_v61  ;;  %v1096_v3 = vadd.f32 %v1095_v1, %v2216_v19  ;;  %1273 = vmatpush1.bf16.xpose.msra.mxu0 %v1247_v51  ;;  %vm1157_vm9 = vcmp.gt.f32.partialorder %v1092_v61, 0.0 }
 0x28a   : >> { %vm1158_vm10 = vcmp.gt.f32.partialorder %v1094_v0, 0.0  ;;  %v1190_v4 = vmul.f32 0.2, %v1094_v0  ;;  %v1220_v6 = vsel %vm1156_vm8, %v1090_v58, %v1188_v63 }
 0x28b   : >> { %vm1159_vm11 = vcmp.gt.f32.partialorder %v1096_v3, 0.0  ;;  %v1191_v5 = vmul.f32 0.2, %v1096_v3  ;;  %v1221_v10 = vsel %vm1157_vm9, %v1092_v61, %v1189_v2 }
 0x28c   : >> { %v1222_v7 = vsel %vm1158_vm10, %v1094_v0, %v1190_v4 }
 0x28d   : >> { %v1249_v8 = vpack.c.bf16 %v1222_v7, %v1220_v6  ;;  %v1099_v9 = vpop.f32.mrb[12].mxu1  ;;  %v1223_v11 = vsel %vm1159_vm11, %v1096_v3, %v1191_v5 }
 0x28e   : >> { %v1100_v12 = vadd.f32 %v1099_v9, %v2212_v18  ;;  %v1101_v13 = vpop.f32.mrb[13].mxu1  ;;  %v1250_v14 = vpack.c.bf16 %v1223_v11, %v1221_v10 }
 0x28f   : >> { %v1102_v15 = vadd.f32 %v1101_v13, %v2216_v19  ;;  %v1103_v16 = vpop.f32.mrb[14].mxu1 }
 0x290   : >> { %v1192_v54 = vmul.f32 0.2, %v1100_v12  ;;  %v1104_v17 = vadd.f32 %v1103_v16, %v2212_v18  ;;  %v1105_v20 = vpop.f32.mrb[15].mxu1  ;;  %1274 = vmatprep.subr.bf16.mxu0 %v1250_v14  ;;  %vm1160_vm12 = vcmp.gt.f32.partialorder %v1100_v12, 0.0 }
 0x291   : >> { %v1193_v21 = vmul.f32 0.2, %v1102_v15  ;;  %v1106_v22 = vadd.f32 %v1105_v20, %v2216_v19  ;;  %1275 = vmatpush1.bf16.xpose.msra.mxu0 %v1249_v8  ;;  %vm1161_vm13 = vcmp.gt.f32.partialorder %v1102_v15, 0.0 }
 0x292   : >> { %vm1162_vm14 = vcmp.gt.f32.partialorder %v1104_v17, 0.0  ;;  %v1194_v23 = vmul.f32 0.2, %v1104_v17  ;;  %v1224_v25 = vsel %vm1160_vm12, %v1100_v12, %v1192_v54 }
 0x293   : >> { %vm1163_vm15 = vcmp.gt.f32.partialorder %v1106_v22, 0.0  ;;  %v1195_v24 = vmul.f32 0.2, %v1106_v22  ;;  %v1225_v50 = vsel %vm1161_vm13, %v1102_v15, %v1193_v21 }
 0x294   : >> { %v1226_v26 = vsel %vm1162_vm14, %v1104_v17, %v1194_v23 }
 0x295   : >> { %v1251_v27 = vpack.c.bf16 %v1226_v26, %v1224_v25  ;;  %v1109_v28 = vpop.f32.mrb[16].mxu1  ;;  %v1227_v49 = vsel %vm1163_vm15, %v1106_v22, %v1195_v24 }
 0x296   : >> { %v1110_v52 = vadd.f32 %v1109_v28, %v2212_v18  ;;  %v1111_v29 = vpop.f32.mrb[17].mxu1  ;;  %v1252_v30 = vpack.c.bf16 %v1227_v49, %v1225_v50 }
 0x297   : >> { %v1112_v31 = vadd.f32 %v1111_v29, %v2216_v19  ;;  %v1113_v32 = vpop.f32.mrb[18].mxu1 }
 0x298   : >> { %v1196_v33 = vmul.f32 0.2, %v1110_v52  ;;  %v1114_v34 = vadd.f32 %v1113_v32, %v2212_v18  ;;  %v1115_v35 = vpop.f32.mrb[19].mxu1  ;;  %1276 = vmatprep.subr.bf16.mxu0 %v1252_v30  ;;  %vm1164_vm0 = vcmp.gt.f32.partialorder %v1110_v52, 0.0 }
 0x299   : >> { %v1197_v36 = vmul.f32 0.2, %v1112_v31  ;;  %v1116_v37 = vadd.f32 %v1115_v35, %v2216_v19  ;;  %1277 = vmatpush1.bf16.xpose.msra.mxu0 %v1251_v27  ;;  %vm1165_vm1 = vcmp.gt.f32.partialorder %v1112_v31, 0.0 }
 0x29a   : >> { %vm1166_vm2 = vcmp.gt.f32.partialorder %v1114_v34, 0.0  ;;  %v1198_v38 = vmul.f32 0.2, %v1114_v34  ;;  %v1228_v40 = vsel %vm1164_vm0, %v1110_v52, %v1196_v33 }
 0x29b   : >> { %vm1167_vm3 = vcmp.gt.f32.partialorder %v1116_v37, 0.0  ;;  %v1199_v39 = vmul.f32 0.2, %v1116_v37  ;;  %v1229_v44 = vsel %vm1165_vm1, %v1112_v31, %v1197_v36 }
 0x29c   : >> { %v1230_v41 = vsel %vm1166_vm2, %v1114_v34, %v1198_v38 }
 0x29d   : >> { %v1253_v42 = vpack.c.bf16 %v1230_v41, %v1228_v40  ;;  %v1119_v43 = vpop.f32.mrb[20].mxu1  ;;  %v1231_v45 = vsel %vm1167_vm3, %v1116_v37, %v1199_v39 }
 0x29e   : >> { %v1120_v46 = vadd.f32 %v1119_v43, %v2212_v18  ;;  %v1121_v47 = vpop.f32.mrb[21].mxu1  ;;  %v1254_v48 = vpack.c.bf16 %v1231_v45, %v1229_v44 }
 0x29f   : >> { %v1122_v51 = vadd.f32 %v1121_v47, %v2216_v19  ;;  %v1123_v55 = vpop.f32.mrb[22].mxu1 }
 0x2a0   : >> { %v1200_v56 = vmul.f32 0.2, %v1120_v46  ;;  %v1124_v57 = vadd.f32 %v1123_v55, %v2212_v18  ;;  %v1125_v58 = vpop.f32.mrb[23].mxu1  ;;  %1278 = vmatprep.subr.bf16.mxu0 %v1254_v48  ;;  %vm1168_vm4 = vcmp.gt.f32.partialorder %v1120_v46, 0.0 }
 0x2a1   : >> { %v1201_v59 = vmul.f32 0.2, %v1122_v51  ;;  %v1126_v60 = vadd.f32 %v1125_v58, %v2216_v19  ;;  %1279 = vmatpush1.bf16.xpose.msra.mxu0 %v1253_v42  ;;  %vm1169_vm5 = vcmp.gt.f32.partialorder %v1122_v51, 0.0 }
 0x2a2   : >> { %vm1170_vm6 = vcmp.gt.f32.partialorder %v1124_v57, 0.0  ;;  %v1202_v61 = vmul.f32 0.2, %v1124_v57  ;;  %v1232_v63 = vsel %vm1168_vm4, %v1120_v46, %v1200_v56 }
 0x2a3   : >> { %vm1171_vm7 = vcmp.gt.f32.partialorder %v1126_v60, 0.0  ;;  %v1203_v62 = vmul.f32 0.2, %v1126_v60  ;;  %v1233_v3 = vsel %vm1169_vm5, %v1122_v51, %v1201_v59 }
 0x2a4   : >> { %v1234_v0 = vsel %vm1170_vm6, %v1124_v57, %v1202_v61 }
 0x2a5   : >> { %v1255_v1 = vpack.c.bf16 %v1234_v0, %v1232_v63  ;;  %v1129_v2 = vpop.f32.mrb[24].mxu1  ;;  %v1235_v4 = vsel %vm1171_vm7, %v1126_v60, %v1203_v62 }
 0x2a6   : >> { %v1130_v5 = vadd.f32 %v1129_v2, %v2212_v18  ;;  %v1131_v6 = vpop.f32.mrb[25].mxu1  ;;  %v1256_v7 = vpack.c.bf16 %v1235_v4, %v1233_v3 }
 0x2a7   : >> { %v1132_v8 = vadd.f32 %v1131_v6, %v2216_v19  ;;  %v1133_v9 = vpop.f32.mrb[26].mxu1 }
 0x2a8   : >> { %v1204_v10 = vmul.f32 0.2, %v1130_v5  ;;  %v1134_v11 = vadd.f32 %v1133_v9, %v2212_v18  ;;  %v1135_v12 = vpop.f32.mrb[27].mxu1  ;;  %1280 = vmatprep.subr.bf16.mxu0 %v1256_v7  ;;  %vm1172_vm8 = vcmp.gt.f32.partialorder %v1130_v5, 0.0 }
 0x2a9   : >> { %v1205_v13 = vmul.f32 0.2, %v1132_v8  ;;  %v1136_v14 = vadd.f32 %v1135_v12, %v2216_v19  ;;  %1281 = vmatpush1.bf16.xpose.msra.mxu0 %v1255_v1  ;;  %vm1173_vm9 = vcmp.gt.f32.partialorder %v1132_v8, 0.0 }
 0x2aa   : >> { %vm1174_vm10 = vcmp.gt.f32.partialorder %v1134_v11, 0.0  ;;  %v1206_v15 = vmul.f32 0.2, %v1134_v11  ;;  %v1236_v54 = vsel %vm1172_vm8, %v1130_v5, %v1204_v10 }
 0x2ab   : >> { %vm1175_vm11 = vcmp.gt.f32.partialorder %v1136_v14, 0.0  ;;  %v1207_v16 = vmul.f32 0.2, %v1136_v14  ;;  %v1237_v22 = vsel %vm1173_vm9, %v1132_v8, %v1205_v13 }
 0x2ac   : >> { %v1238_v17 = vsel %vm1174_vm10, %v1134_v11, %v1206_v15 }
 0x2ad   : >> { %v1257_v20 = vpack.c.bf16 %v1238_v17, %v1236_v54  ;;  %v1139_v21 = vpop.f32.mrb[28].mxu1  ;;  %v1239_v23 = vsel %vm1175_vm11, %v1136_v14, %v1207_v16 }
 0x2ae   : >> { %v1140_v24 = vadd.f32 %v1139_v21, %v2212_v18  ;;  %v1141_v25 = vpop.f32.mrb[29].mxu1  ;;  %v1258_v26 = vpack.c.bf16 %v1239_v23, %v1237_v22 }
 0x2af   : >> { %v1142_v27 = vadd.f32 %v1141_v25, %v2216_v19  ;;  %v1143_v28 = vpop.f32.mrb[30].mxu1 }
 0x2b0   : >> { %v1208_v50 = vmul.f32 0.2, %v1140_v24  ;;  %v1144_v49 = vadd.f32 %v1143_v28, %v2212_v18  ;;  %v1145_v52 = vpop.f32.mrb[31].mxu1  ;;  %1282 = vmatprep.subr.bf16.mxu0 %v1258_v26  ;;  %vm1176_vm12 = vcmp.gt.f32.partialorder %v1140_v24, 0.0  ;;  %v1519_v18 = vcombine.low %v2203_v53, %v2203_v53 }
 0x2b1   : >> { %v1209_v29 = vmul.f32 0.2, %v1142_v27  ;;  %v1146_v30 = vadd.f32 %v1145_v52, %v2216_v19  ;;  %1283 = vmatpush1.bf16.xpose.msra.mxu0 %v1257_v20  ;;  %vm1177_vm13 = vcmp.gt.f32.partialorder %v1142_v27, 0.0  ;;  %v1262_v19 = vstv %s1261_s23 }
 0x2b2   : >> { %vm1178_vm14 = vcmp.gt.f32.partialorder %v1144_v49, 0.0  ;;  %v1210_v31 = vmul.f32 0.2, %v1144_v49  ;;  %v1240_v33 = vsel %vm1176_vm12, %v1140_v24, %v1208_v50 }
 0x2b3   : >> { %vm1179_vm15 = vcmp.gt.f32.partialorder %v1146_v30, 0.0  ;;  %v1211_v32 = vmul.f32 0.2, %v1146_v30  ;;  %v1241_v36 = vsel %vm1177_vm13, %v1142_v27, %v1209_v29 }
 0x2b4   : >> { %v1242_v34 = vsel %vm1178_vm14, %v1144_v49, %v1210_v31 }
 0x2b5   : >> { %v1259_v35 = vpack.c.bf16 %v1242_v34, %v1240_v33  ;;  %v1243_v37 = vsel %vm1179_vm15, %v1146_v30, %v1211_v32 }
 0x2b6   : >> { %v1260_v38 = vpack.c.bf16 %v1243_v37, %v1241_v36 }
 0x2b8   : >> { %1284 = vmatprep.subr.bf16.mxu0 %v1260_v38 }
 0x2b9   : >> { %1285 = vmatpush1.bf16.xpose.msra.mxu0 %v1259_v35 }
 0x2c0   : >> { %1303 = vmatmul.mubr.bf16.vlgmr.msra.gmra.mrb[32].mxu0 %v1519_v18 }
 0x393   : >> { %v1304_v39 = vpop.f32.mrb[32].mxu0 }
 0x394   : >> { %v1305_v40 = vadd.f32 %v1304_v39, %v1262_v19  ;;  %v1306_v41 = vpop.f32.mrb[33].mxu0 }
 0x395   : >> { %v1307_v42 = vpop.f32.mrb[34].mxu0 }
 0x396   : >> { %v1310_v43 = vsub.f32 0.0, %v1305_v40  ;;  %v1308_v44 = vpop.f32.mrb[35].mxu0 }
 0x398   : >> { %v1311_v45 = vmul.f32 1.442695, %v1310_v43 }
 0x39a   : >> { %1703 = vpow2.f32 %v1311_v45 }
 0x3a4   : >> { %v1704_v46 = vpop.eup %1703 }
 0x3a5   : >> { %v1313_v47 = vadd.f32 1.0, %v1704_v46 }
 0x3a7   : >> { %1705 = vrcp.f32 %v1313_v47 }
 0x3ac   : > { %346 = sbr.rel (!%p344_p9) target bundleno = 130 (0x82), region = 110 }
 0x3b1   : >> { %v1706_v53 = vpop.eup %1705 }
 0x3b2   : >> { %1319 = vst [vmem:[%s1318_s17] sm:$0xff] %v1706_v53 }
 0x3b3   : > { %1804 = shalt.err (!%p1801_p0)
}
 0x3b4   : > { %s1805_s6 = scalar_lea.hbm %s2262_s22, 256  ;;  %s1809_s8 = scalar_lea.hbm %s2308_s7, 512 }
 0x3b5   : > { %p1806_p12 = scmp.ne.s32.totalorder %s2262_s22, %s1805_s6  ;;  %p1810_p8 = scmp.lt.u32.totalorder %s2262_s22, %s2308_s7 }
 0x3b6   : > { %p1811_p9 = scmp.lt.u32.totalorder %s1809_s8, %s1805_s6  ;;  %p1813_p3 = scmp.lt.u32.totalorder %s1805_s6, %s2262_s22 }
 0x3b7   : > { %p1807_p7 = pnand %p1806_p12, %p2328_p1 }
 0x3b8   : > { %p1812_p10 = por %p1811_p9, %p1810_p8 }
 0x3b9   : > { %p1808_p2 = pneg %p1807_p7 }
 0x3ba   : > { %p1814_p5 = por %p1813_p3, %p1812_p10 }
 0x3bc   : > { %p1815_p6 = pnand %p1814_p5, %p1808_p2 }
 0x3be   : > { %1818 = shalt.err (!%p1815_p6)
}
 0x3bf   : > { %1541 = dma.vmem_to_hbm [thread:$0]  (%p2328_p1), %s1336_s13, 256, %s2262_s22, %s1321_s12  }
 0x3c0 PF: > { %s1347_s16 = sand.u32 1, %s1853_s26   ;;  %p2329_p11 = scmp.ne.s32.totalorder %s2320_s15, 0 }
 0x3c1   : > { %s1348_s17 = scalar_lea.sflag [#allocation5], %s1347_s16 }
 0x3c2   : > { %p1551_p13 = pnand %p1437_p4, %p2329_p11 }
 0x3c4   : > { %1848 = dma.done.wait (!%p1551_p13), %s1348_s17, 256  }
 0x3c5   : > { %1850 = vsyncadd (!%p1551_p13), %s1348_s17, 4294967040  ;;  %s2330_s29 = sld [smem:[#allocation13_spill]]  ;;  %s2331_s18 = sld [smem:[#allocation14_spill]] }
 0x3c6   : > { %s2332_s26 = smov %s1857_s27  ;;  %s2333_s27 = smov %s1861_s28 }
 0x3cb   : > { %p22_p0 = scmp.ge.s32.totalorder %s2330_s29, 4   ;;  %s2334_s28 = smov %s2331_s18 }
 0x3cd   :  { %24 = sbr.rel (!%p22_p0) target bundleno = 8 (0x8), region = 121 }
 0x3d4   :  { %1353 = vsyncpa [#allocation4], 1 }
 0x3d5   :  { %1355 = vsyncpa [#allocation4 + $0x1], 1 }
 0x3d6   :  { %1356 = vsyncpa [#allocation7], 1 }
 0x3d7   :  { %1357 = vsyncpa [#allocation5], 1 }
 0x3d8   :  { %1359 = vsyncpa [#allocation5 + $0x1], 1 }

</bundles_post_ra>
